<compile_context>
chip_gen: v7x
topology: tpu7x:2x2x1
jax: 0.10.0
libtpu: 0.0.40
codegen_flags: <defaults>
</compile_context>

<pallas_src>
import jax
import jax.numpy as jnp
from jax.experimental import pallas as pl
from jax.experimental.pallas import tpu as pltpu  # noqa: F401  (not needed at this size)

# ----------------------------- model sizes ---------------------------------
N = 2            # batch
C_IN = 4         # input channels
H = W = 16       # spatial
C_SEG = 3        # segmentation output channels
HID = 32         # classifier hidden channels
NUM_CLASSES = 5  # classifier logits
HW = H * W       # 256 lanes per batch element
NHW = N * HW     # 512 lanes total (batch folded into lanes)

# ------------------------ packed-parameter layout ---------------------------
# One (HID + C_SEG, 8) array, column layout matches the augmented activation rows:
#   cols [0, C_IN)              : weights vs image channels
#   col  C_IN                   : bias  (multiplies the constant "ones" row)
#   cols [C_IN+1, C_IN+1+C_SEG) : weights vs sigmoid(seg) channels (zero for seg rows)
# Row layout:
#   rows [0, HID)               : classifier 1x1 conv
#   rows [HID, HID + C_SEG)     : segmentation 1x1 conv
P_ROWS = HID + C_SEG
P_COLS = C_IN + 1 + C_SEG          # == 8
BIAS_COL = C_IN
SEGW_COL = C_IN + 1
OUT_ROWS = C_SEG + HID


# ----------------------------- Pallas kernel --------------------------------
def segclf_kernel(p_ref, x_ref, out_ref):
    x = x_ref[...]                                               # (C_IN, NHW)
    nhw = x.shape[1]

    ones_row = jnp.ones((1, nhw), dtype=jnp.float32)
    zeros_seg = jnp.zeros((C_SEG, nhw), dtype=jnp.float32)

    # Augmented activations [img ; 1 ; seg_act]: biases fold into the dots and the
    # torch.cat([img, sigmoid(seg)]) becomes a single 8-row MXU operand.
    x_aug = jnp.concatenate([x, ones_row, zeros_seg], axis=0)    # (8, NHW)

    # segmentation 1x1 conv (+ bias).  The seg-weight columns of these rows are zero,
    # so the zero placeholder rows of x_aug contribute nothing.
    seg = jnp.dot(p_ref[HID:HID + C_SEG, :], x_aug,
                  preferred_element_type=jnp.float32)            # (C_SEG, NHW)
    out_ref[0:C_SEG, :] = seg

    # classifier 1x1 conv (+ bias) over [img ; sigmoid(seg)], then ReLU.
    x_aug = jnp.concatenate([x, ones_row, jax.nn.sigmoid(seg)], axis=0)
    h = jnp.dot(p_ref[0:HID, :], x_aug, preferred_element_type=jnp.float32)
    h = jnp.maximum(h, 0.0)                                      # (HID, NHW)

    # per-batch global average pool, broadcast back across that batch's lanes so the
    # whole result ships out as one lane-dense slab (single full-width output DMA,
    # no lane-width-1 store).
    for b in range(N):                                           # static unroll, N = 2
        pooled_b = jnp.mean(h[:, b * HW:(b + 1) * HW], axis=1, keepdims=True)
        out_ref[C_SEG:, b * HW:(b + 1) * HW] = jnp.broadcast_to(pooled_b, (HID, HW))


def segclf_forward(img_nchw, params):
    """img_nchw: (N, C_IN, H, W) float32. Returns (pred_seg NCHW, pred_clf (N, NUM_CLASSES))."""
    w_seg, b_seg, w1, b1, w2, b2 = params
    n, c, h, w = img_nchw.shape
    hw = h * w
    nhw = n * hw

    # (N, C, H, W) -> (C, N*HW): one tiny (~8 KiB) XLA transpose that folds the whole
    # batch into the lane axis (512 = 4 * 128 lanes), enabling a single-step grid.
    x2d = jnp.transpose(img_nchw.reshape(n, c, hw), (1, 0, 2)).reshape(c, nhw)

    # Pack every conv parameter into one small array -> a single resident param DMA.
    pp = jnp.zeros((P_ROWS, P_COLS), dtype=jnp.float32)
    pp = pp.at[0:HID, 0:C_IN].set(w1[0:C_IN, :].T)                     # clf: img weights
    pp = pp.at[0:HID, BIAS_COL].set(b1[0])                             # clf: bias
    pp = pp.at[0:HID, SEGW_COL:SEGW_COL + C_SEG].set(w1[C_IN:, :].T)   # clf: seg weights
    pp = pp.at[HID:HID + C_SEG, 0:C_IN].set(w_seg.T)                   # seg: img weights
    pp = pp.at[HID:HID + C_SEG, BIAS_COL].set(b_seg[0])                # seg: bias

    slab = pl.pallas_call(
        segclf_kernel,
        out_shape=jax.ShapeDtypeStruct((OUT_ROWS, nhw), jnp.float32),
        grid=(1,),
        in_specs=[
            pl.BlockSpec((P_ROWS, P_COLS), lambda i: (0, 0)),   # packed params (one DMA)
            pl.BlockSpec((c, nhw), lambda i: (0, 0)),           # whole batch, lane-dense
        ],
        out_specs=pl.BlockSpec((OUT_ROWS, nhw), lambda i: (0, 0)),
    )(pp, x2d)

    # Unpack: rows [0, C_SEG) = segmentation maps; rows [C_SEG, C_SEG+HID) hold the
    # pooled classifier features broadcast across each batch's lanes.
    pred_seg = jnp.transpose(slab[0:C_SEG, :].reshape(C_SEG, n, hw),
                             (1, 0, 2)).reshape(n, C_SEG, h, w)
    pooled = slab[C_SEG:, 0::hw].T                                     # (N, HID)
    pred_clf = pooled @ w2 + b2                                        # tiny head in XLA
    return pred_seg, pred_clf


# ----------------------------- reference (pure JAX) --------------------------
def segclf_reference(img_nchw, params):
    w_seg, b_seg, w1, b1, w2, b2 = params
    n, c, h, w = img_nchw.shape
    x = jnp.transpose(img_nchw, (0, 2, 3, 1)).reshape(n, h * w, c)
    seg = x @ w_seg + b_seg
    clf_in = jnp.concatenate([x, jax.nn.sigmoid(seg)], axis=-1)
    hid = jnp.maximum(clf_in @ w1 + b1, 0.0)
    pooled = jnp.mean(hid, axis=1)
    logits = pooled @ w2 + b2[0]
    pred_seg = jnp.transpose(seg.reshape(n, h, w, C_SEG), (0, 3, 1, 2))
    return pred_seg, logits


# ----------------------------- main ------------------------------------------
if __name__ == "__main__":
    key = jax.random.PRNGKey(0)
    k_img, k0, k1, k2, k3, k4, k5 = jax.random.split(key, 7)

    img = jax.random.normal(k_img, (N, C_IN, H, W), dtype=jnp.float32)

    # deterministic synthetic parameters (same layout as the original script)
    w_seg = 0.1 * jax.random.normal(k0, (C_IN, C_SEG), dtype=jnp.float32)
    b_seg = 0.1 * jax.random.normal(k1, (1, C_SEG), dtype=jnp.float32)
    w1 = 0.1 * jax.random.normal(k2, (C_IN + C_SEG, HID), dtype=jnp.float32)
    b1 = 0.1 * jax.random.normal(k3, (1, HID), dtype=jnp.float32)
    w2 = 0.1 * jax.random.normal(k4, (HID, NUM_CLASSES), dtype=jnp.float32)
    b2 = 0.1 * jax.random.normal(k5, (1, NUM_CLASSES), dtype=jnp.float32)
    params = (w_seg, b_seg, w1, b1, w2, b2)

    pred_seg, pred_clf = segclf_forward(img, params)
    jax.block_until_ready((pred_seg, pred_clf))

    ref_seg, ref_clf = segclf_reference(img, params)
    assert pred_seg.shape == (N, C_SEG, H, W)
    assert pred_clf.shape == (N, NUM_CLASSES)
    assert jnp.allclose(pred_seg, ref_seg, atol=1e-5, rtol=1e-5)
    assert jnp.allclose(pred_clf, ref_clf, atol=1e-5, rtol=1e-5)

    print("KERNEL_OK")
</pallas_src>

<mosaic_0001>
module attributes {stable_mosaic.version = 11 : i64} {
  func.func @segclf_kernel(%arg0: i32, %arg1: memref<35x8xf32, #tpu.memory_space<vmem>>, %arg2: memref<4x512xf32, #tpu.memory_space<vmem>>, %arg3: memref<35x512xf32, #tpu.memory_space<vmem>>) attributes {dimension_semantics = [#tpu.dimension_semantics<arbitrary>], iteration_bounds = array<i64: 1>, scalar_prefetch = 0 : i64, scratch_operands = 0 : i64, tpu.core_type = #tpu.core_type<tc>, window_params = [{pipeline_mode = #tpu.pipeline_mode<synchronous>, transform_indices = @transform_0, window_bounds = array<i64: 35, 8>}, {pipeline_mode = #tpu.pipeline_mode<synchronous>, transform_indices = @transform_1, window_bounds = array<i64: 4, 512>}, {pipeline_mode = #tpu.pipeline_mode<synchronous>, transform_indices = @transform_2, window_bounds = array<i64: 35, 512>}]} {
    %c0 = arith.constant 0 : index
    %c0_0 = arith.constant 0 : index
    %0 = vector.load %arg2[%c0, %c0_0] : memref<4x512xf32, #tpu.memory_space<vmem>>, vector<4x512xf32>
    %cst = arith.constant 1.000000e+00 : f32
    %1 = vector.broadcast %cst : f32 to vector<1x512xf32>
    %cst_1 = arith.constant 0.000000e+00 : f32
    %2 = vector.broadcast %cst_1 : f32 to vector<3x512xf32>
    %3 = tpu.concatenate %0, %1, %2 in 0 : vector<4x512xf32>, vector<1x512xf32>, vector<3x512xf32> -> vector<8x512xf32>
    %c32 = arith.constant 32 : index
    %c0_2 = arith.constant 0 : index
    %4 = vector.load %arg1[%c32, %c0_2] : memref<35x8xf32, #tpu.memory_space<vmem>>, vector<3x8xf32>
    %cst_3 = arith.constant dense<0.000000e+00> : vector<3x512xf32>
    %5 = tpu.matmul %4, %3, %cst_3 {dimension_numbers = #tpu.dot_dimension_numbers<[1], [0], [0], [1], [0, 0, 1, 1], [], []>} : vector<3x8xf32>, vector<8x512xf32>, vector<3x512xf32> -> vector<3x512xf32>
    %c0_4 = arith.constant 0 : index
    %c0_5 = arith.constant 0 : index
    %6 = vector.load %arg3[%c0_4, %c0_5] : memref<35x512xf32, #tpu.memory_space<vmem>>, vector<3x512xf32>
    tpu.vector_store %arg3[%c0_4, %c0_5], %5 {strides = array<i32>} : memref<35x512xf32, #tpu.memory_space<vmem>>, vector<3x512xf32>,
    %7 = arith.negf %5 : vector<3x512xf32>
    %8 = math.exp %7 : vector<3x512xf32>
    %cst_6 = arith.constant 1.000000e+00 : f32
    %9 = vector.broadcast %cst_6 : f32 to vector<3x512xf32>
    %10 = arith.addf %9, %8 : vector<3x512xf32>
    %11 = arith.divf %9, %10 : vector<3x512xf32>
    %12 = tpu.concatenate %0, %1, %11 in 0 : vector<4x512xf32>, vector<1x512xf32>, vector<3x512xf32> -> vector<8x512xf32>
    %c0_7 = arith.constant 0 : index
    %c0_8 = arith.constant 0 : index
    %13 = vector.load %arg1[%c0_7, %c0_8] : memref<35x8xf32, #tpu.memory_space<vmem>>, vector<32x8xf32>
    %cst_9 = arith.constant dense<0.000000e+00> : vector<32x512xf32>
    %14 = tpu.matmul %13, %12, %cst_9 {dimension_numbers = #tpu.dot_dimension_numbers<[1], [0], [0], [1], [0, 0, 1, 1], [], []>} : vector<32x8xf32>, vector<8x512xf32>, vector<32x512xf32> -> vector<32x512xf32>
    %cst_10 = arith.constant 0.000000e+00 : f32
    %15 = vector.broadcast %cst_10 : f32 to vector<32x512xf32>
    %16 = arith.maximumf %14, %15 : vector<32x512xf32>
    %17 = vector.extract_strided_slice %16 {offsets = [0, 0], sizes = [32, 256], strides = [1, 1]} : vector<32x512xf32> to vector<32x256xf32>
    %cst_11 = arith.constant dense<0.000000e+00> : vector<32xf32>
    %18 = vector.multi_reduction <add>, %17, %cst_11 [1] : vector<32x256xf32> to vector<32xf32>
    %19 = vector.shape_cast %18 : vector<32xf32> to vector<32x1xf32>
    %cst_12 = arith.constant 2.560000e+02 : f32
    %20 = vector.broadcast %cst_12 : f32 to vector<32x1xf32>
    %21 = arith.divf %19, %20 : vector<32x1xf32>
    %22 = vector.shape_cast %21 : vector<32x1xf32> to vector<32x1xf32>
    %23 = vector.broadcast %22 : vector<32x1xf32> to vector<32x256xf32>
    %c3 = arith.constant 3 : index
    %c0_13 = arith.constant 0 : index
    %24 = vector.load %arg3[%c3, %c0_13] : memref<35x512xf32, #tpu.memory_space<vmem>>, vector<32x256xf32>
    tpu.vector_store %arg3[%c3, %c0_13], %23 {strides = array<i32>} : memref<35x512xf32, #tpu.memory_space<vmem>>, vector<32x256xf32>,
    %25 = vector.extract_strided_slice %16 {offsets = [0, 256], sizes = [32, 256], strides = [1, 1]} : vector<32x512xf32> to vector<32x256xf32>
    %cst_14 = arith.constant dense<0.000000e+00> : vector<32xf32>
    %26 = vector.multi_reduction <add>, %25, %cst_14 [1] : vector<32x256xf32> to vector<32xf32>
    %27 = vector.shape_cast %26 : vector<32xf32> to vector<32x1xf32>
    %cst_15 = arith.constant 2.560000e+02 : f32
    %28 = vector.broadcast %cst_15 : f32 to vector<32x1xf32>
    %29 = arith.divf %27, %28 : vector<32x1xf32>
    %30 = vector.shape_cast %29 : vector<32x1xf32> to vector<32x1xf32>
    %31 = vector.broadcast %30 : vector<32x1xf32> to vector<32x256xf32>
    %c3_16 = arith.constant 3 : index
    %c256 = arith.constant 256 : index
    %32 = vector.load %arg3[%c3_16, %c256] : memref<35x512xf32, #tpu.memory_space<vmem>>, vector<32x256xf32>
    tpu.vector_store %arg3[%c3_16, %c256], %31 {strides = array<i32>} : memref<35x512xf32, #tpu.memory_space<vmem>>, vector<32x256xf32>,
    return
  }
  func.func @transform_0(%arg0: i32) -> (i32, i32) {
    %c0_i32 = arith.constant 0 : i32
    %c0_i32_0 = arith.constant 0 : i32
    %c0_i32_1 = arith.constant 0 : i32
    return %c0_i32, %c0_i32_0 : i32, i32
  }
  func.func @transform_1(%arg0: i32) -> (i32, i32) {
    %c0_i32 = arith.constant 0 : i32
    %c0_i32_0 = arith.constant 0 : i32
    %c0_i32_1 = arith.constant 0 : i32
    return %c0_i32, %c0_i32_0 : i32, i32
  }
  func.func @transform_2(%arg0: i32) -> (i32, i32) {
    %c0_i32 = arith.constant 0 : i32
    %c0_i32_0 = arith.constant 0 : i32
    %c0_i32_1 = arith.constant 0 : i32
    return %c0_i32, %c0_i32_0 : i32, i32
  }
}

</mosaic_0001>

<bundles_post_ra>
// kernel: tpu_custom_call.1
= control target key start
LH: loop header
LB: loop body
LE: loop exit
PB: predicated region body
PF: predicated region fallthrough
CT: control target
= control target key end

     0   :  { %vm20_vm0 = vcmask 1043456   ;;  %vm25_vm1 = vcmask 1044480   ;;  %v597_v4 = vmov 0.0   ;;  %s683_s0 = inlined_call_operand.vmem [shape: f32[35,8], index: 0, kind: input, shape index: {}]   ;;  %s684_s1 = inlined_call_operand.vmem [shape: f32[4,512], index: 1, kind: input, shape index: {}]   ;;  %s685_s2 = inlined_call_operand.hbm [shape: f32[35,512], index: 2, kind: output, shape index: {}]  }
   0x1   :  { %v12_v0 = vld [vmem:[%s684_s1] sm:$0xff]  ;;  %v13_v1 = vld [vmem:[%s684_s1 + $0x8] sm:$0xff]  ;;  %99 = vmatprep.mubr.f32.mxu0 %v597_v4  ;;  %170 = vmatprep.mubr.f32.mxu1 %v597_v4 }
   0x2   :  { %v16_v2 = vcombine.high %v12_v0, %v12_v0  ;;  %v17_v3 = vcombine.high %v13_v1, %v13_v1 }
   0x3   :  { %7 = vsyncpa [#allocation3], 0  ;;  %v21_v5 = vsel %vm20_vm0, %v12_v0, 1.0  ;;  %v23_v6 = vsel %vm20_vm0, %v13_v1, 1.0  ;;  %v30_v9 = vld [vmem:[%s683_s0 + $0x20] sm:$0x7] }
   0x4   :  { %v22_v7 = vsel %vm20_vm0, %v16_v2, 1.0  ;;  %v24_v8 = vsel %vm20_vm0, %v17_v3, 1.0  ;;  %vm31_vm2 = vcmask 64512   ;;  %v221_v35 = vld [vmem:[%s683_s0] sm:$0xff]  ;;  %v222_v39 = vld [vmem:[%s683_s0 + $0x8] sm:$0xff]  ;;  %v223_v40 = vld [vmem:[%s683_s0 + $0x10] sm:$0xff] }
   0x5   :  { %533 = vmatprep.subr.msk.mxu0 %vm25_vm1, %v22_v7  ;;  %536 = vmatprep.subr.msk.mxu1 %vm25_vm1, %v24_v8  ;;  %v224_v41 = vld [vmem:[%s683_s0 + $0x18] sm:$0xff]  ;;  %vm452_vm3 = vcmask 1042432   ;;  %s598_s0 = smov [#allocation2]  }
   0x6   :  { %534 = vmatpush1.msk.msra.mxu0 %vm25_vm1, %v21_v5  ;;  %537 = vmatpush1.msk.msra.mxu1 %vm25_vm1, %v23_v6  ;;  %s522_s22 = sshll.u32 %s598_s0, 4  ;;  %s523_s22 = int_to_ptr.vmem [resolvable:$true] %s522_s22 }
   0x7   :  { %535 = vmatmul.mubr.msk.f32.vlgmr.msra.gmra.mrb[0].mxu0 %vm31_vm2, %v30_v9  ;;  %538 = vmatmul.mubr.msk.f32.vlgmr.msra.gmra.mrb[0].mxu1 %vm31_vm2, %v30_v9  ;;  %s573_s23 = scalar_lea.vmem %s523_s22, 2560  ;;  %p578_p1 = scmp.lt.s32.totalorder %s523_s22, %s523_s22 }
   0x8   :  { %301 = vmatprep.mubr.f32.mxu0 %v597_v4  ;;  %390 = vmatprep.mubr.f32.mxu1 %v597_v4  ;;  %p574_p0 = scmp.ne.s32.totalorder %s523_s22, %s573_s23  ;;  %p579_p2 = scmp.lt.s32.totalorder %s573_s23, %s573_s23 }
   0xa   :  { %p580_p3 = por %p579_p2, %p578_p1 }
   0xc   :  { %p581_p4 = pnand %p580_p3, %p574_p0 }
  0xda   :  { %v101_v10 = vpop.f32.mrb[0].mxu0  ;;  %v172_v11 = vpop.f32.mrb[0].mxu1 }
  0xdb   :  { %177 = vst [vmem:[#allocation2] sm:$0x7] %v101_v10  ;;  %v539_v12 = vmul.f32 -1.442695, %v101_v10  ;;  %179 = vst [vmem:[#allocation2 + $0x10] sm:$0x7] %v172_v11 }
  0xdc   :  { %v541_v13 = vmul.f32 -1.442695, %v172_v11  ;;  %v103_v14 = vpop.f32.mrb[1].mxu0  ;;  %v174_v15 = vpop.f32.mrb[1].mxu1 }
  0xdd   :  { %178 = vst [vmem:[#allocation2 + $0x8] sm:$0x7] %v103_v14  ;;  %v540_v16 = vmul.f32 -1.442695, %v103_v14  ;;  %180 = vst [vmem:[#allocation2 + $0x18] sm:$0x7] %v174_v15  ;;  %557 = vpow2.f32 %v539_v12 }
  0xde   :  { %v542_v17 = vmul.f32 -1.442695, %v174_v15  ;;  %559 = vpow2.f32 %v541_v13 }
  0xdf   :  { %561 = vpow2.f32 %v540_v16 }
  0xe0   :  { %563 = vpow2.f32 %v542_v17 }
  0xe7   :  { %v558_v18 = vpop.eup %557 }
  0xe8   :  { %v560_v19 = vpop.eup %559  ;;  %v193_v20 = vadd.f32 1.0, %v558_v18 }
  0xe9   :  { %v562_v21 = vpop.eup %561  ;;  %v195_v22 = vadd.f32 1.0, %v560_v19 }
  0xea   :  { %v564_v23 = vpop.eup %563  ;;  %565 = vrcp.f32 %v193_v20  ;;  %v194_v24 = vadd.f32 1.0, %v562_v21 }
  0xeb   :  { %567 = vrcp.f32 %v195_v22  ;;  %v196_v25 = vadd.f32 1.0, %v564_v23 }
  0xec   :  { %569 = vrcp.f32 %v194_v24 }
  0xed   :  { %571 = vrcp.f32 %v196_v25 }
  0xf4   :  { %v566_v26 = vpop.eup %565 }
  0xf5   :  { %v568_v27 = vpop.eup %567  ;;  %v209_v29 = vrot.slane %v566_v26, 3 }
  0xf6   :  { %v570_v28 = vpop.eup %569  ;;  %v211_v32 = vrot.slane %v568_v27, 3 }
  0xf7   :  { %v572_v30 = vpop.eup %571  ;;  %v210_v31 = vrot.slane %v570_v28, 3  ;;  %v217_v37 = vsel %vm25_vm1, %v21_v5, %v209_v29 }
  0xf8   :  { %v212_v33 = vrot.slane %v572_v30, 3  ;;  %v219_v38 = vsel %vm25_vm1, %v23_v6, %v211_v32 }
  0xf9   :  { %v218_v34 = vsel %vm25_vm1, %v22_v7, %v210_v31 }
  0xfa   :  { %237 = vmatprep.subr.mxu0 %v218_v34  ;;  %v220_v36 = vsel %vm25_vm1, %v24_v8, %v212_v33 }
  0xfb   :  { %326 = vmatprep.subr.mxu1 %v220_v36  ;;  %238 = vmatpush1.msra.mxu0 %v217_v37 }
  0xfc   :  { %327 = vmatpush1.msra.mxu1 %v219_v38  ;;  %543 = vmatmul.mubr.msk.f32.vlgmr.msra.gmra.mrb[2].mxu0 %vm31_vm2, %v221_v35 }
  0xfd   :  { %547 = vmatmul.mubr.msk.f32.vlgmr.msra.gmra.mrb[2].mxu1 %vm31_vm2, %v221_v35  ;;  %307 = vmatprep.mubr.f32.mxu0 %v597_v4 }
  0xfe   :  { %396 = vmatprep.mubr.f32.mxu1 %v597_v4 }
 0x100   :  { %544 = vmatmul.mubr.msk.f32.gmra.mrb[4].mxu0 %vm31_vm2, %v222_v39 }
 0x101   :  { %548 = vmatmul.mubr.msk.f32.gmra.mrb[4].mxu1 %vm31_vm2, %v222_v39  ;;  %313 = vmatprep.mubr.f32.mxu0 %v597_v4 }
 0x102   :  { %402 = vmatprep.mubr.f32.mxu1 %v597_v4 }
 0x104   :  { %545 = vmatmul.mubr.msk.f32.gmra.mrb[6].mxu0 %vm31_vm2, %v223_v40 }
 0x105   :  { %319 = vmatprep.mubr.f32.mxu0 %v597_v4  ;;  %549 = vmatmul.mubr.msk.f32.gmra.mrb[6].mxu1 %vm31_vm2, %v223_v40 }
 0x106   :  { %408 = vmatprep.mubr.f32.mxu1 %v597_v4 }
 0x108   :  { %546 = vmatmul.mubr.msk.f32.gmra.mrb[8].mxu0 %vm31_vm2, %v224_v41 }
 0x109   :  { %550 = vmatmul.mubr.msk.f32.gmra.mrb[8].mxu1 %vm31_vm2, %v224_v41 }
 0x1cf   :  { %v303_v42 = vpop.f32.mrb[2].mxu0 }
 0x1d0   :  { %v415_v43 = vmax.f32 %v303_v42, 0.0  ;;  %v305_v44 = vpop.f32.mrb[3].mxu0  ;;  %v392_v45 = vpop.f32.mrb[2].mxu1 }
 0x1d1   :  { %v416_v46 = vmax.f32 %v305_v44, 0.0  ;;  %v417_v47 = vmax.f32 %v392_v45, 0.0  ;;  %v394_v48 = vpop.f32.mrb[3].mxu1 }
 0x1d2   :  { %v418_v49 = vmax.f32 %v394_v48, 0.0 }
 0x1d3   :  { %v431_v50 = vadd.f32 %v416_v46, %v415_v43  ;;  %v309_v51 = vpop.f32.mrb[4].mxu0 }
 0x1d4   :  { %v398_v52 = vpop.f32.mrb[4].mxu1  ;;  %v419_v53 = vmax.f32 %v309_v51, 0.0  ;;  %v311_v54 = vpop.f32.mrb[5].mxu0  ;;  %v475_v55 = vadd.f32 %v418_v49, %v417_v47 }
 0x1d5   :  { %v421_v56 = vmax.f32 %v398_v52, 0.0  ;;  %v400_v57 = vpop.f32.mrb[5].mxu1  ;;  %432 = vadd.xlane.f32.xlu0 %v431_v50  ;;  %v420_v58 = vmax.f32 %v311_v54, 0.0 }
 0x1d6   :  { %v422_v59 = vmax.f32 %v400_v57, 0.0 }
 0x1d7   :  { %v315_v60 = vpop.f32.mrb[6].mxu0  ;;  %v434_v61 = vadd.f32 %v420_v58, %v419_v53 }
 0x1d8   :  { %v423_v62 = vmax.f32 %v315_v60, 0.0  ;;  %v317_v63 = vpop.f32.mrb[7].mxu0  ;;  %v478_v0 = vadd.f32 %v422_v59, %v421_v56  ;;  %v404_v1 = vpop.f32.mrb[6].mxu1 }
 0x1d9   :  { %v424_v2 = vmax.f32 %v317_v63, 0.0  ;;  %476 = vadd.xlane.f32.xlu0 %v475_v55  ;;  %v425_v3 = vmax.f32 %v404_v1, 0.0  ;;  %v406_v4 = vpop.f32.mrb[7].mxu1 }
 0x1da   :  { %479 = vadd.xlane.f32.xlu1 %v478_v0  ;;  %v426_v5 = vmax.f32 %v406_v4, 0.0 }
 0x1db   :  { %v321_v6 = vpop.f32.mrb[8].mxu0  ;;  %v437_v7 = vadd.f32 %v424_v2, %v423_v62 }
 0x1dc   :  { %v427_v8 = vmax.f32 %v321_v6, 0.0  ;;  %v323_v9 = vpop.f32.mrb[9].mxu0  ;;  %v410_v10 = vpop.f32.mrb[8].mxu1  ;;  %v481_v11 = vadd.f32 %v426_v5, %v425_v3 }
 0x1dd   :  { %v428_v12 = vmax.f32 %v323_v9, 0.0  ;;  %435 = vadd.xlane.f32.xlu0 %v434_v61  ;;  %v429_v13 = vmax.f32 %v410_v10, 0.0  ;;  %v412_v14 = vpop.f32.mrb[9].mxu1 }
 0x1de   :  { %438 = vadd.xlane.f32.xlu1 %v437_v7  ;;  %v430_v15 = vmax.f32 %v412_v14, 0.0 }
 0x1df   :  { %v440_v16 = vadd.f32 %v428_v12, %v427_v8 }
 0x1e0   :  { %v484_v17 = vadd.f32 %v430_v15, %v429_v13 }
 0x1e1   :  { %482 = vadd.xlane.f32.xlu0 %v481_v11 }
 0x1e2   :  { %441 = vadd.xlane.f32.xlu1 %v440_v16 }
 0x1e6   :  { %485 = vadd.xlane.f32.xlu1 %v484_v17 }
 0x262   :  { %v433_v18 = vpop.xlane.xlu0 %432 }
 0x263   :  { %v444_v19 = vmul.f32 0.00390625, %v433_v18 }
 0x265   :  { %v453_v20 = vrot.slane %v444_v19, 5 }
 0x266   :  { %v477_v21 = vpop.xlane.xlu0 %476 }
 0x267   :  { %465 = vst [vmem:[#allocation2] sm:$0xf8] %v453_v20  ;;  %466 = vst [vmem:[#allocation2 + $0x8] sm:$0xf8] %v453_v20  ;;  %v480_v22 = vpop.xlane.xlu1 %479  ;;  %v487_v23 = vmul.f32 0.00390625, %v477_v21 }
 0x268   :  { %v488_v24 = vmul.f32 0.00390625, %v480_v22 }
 0x269   :  { %v495_v25 = vrot.slane %v487_v23, 5 }
 0x26a   :  { %v496_v26 = vrot.slane %v488_v24, 5  ;;  %v436_v27 = vpop.xlane.xlu0 %435 }
 0x26b   :  { %507 = vst [vmem:[#allocation2 + $0x10] sm:$0xf8] %v495_v25  ;;  %508 = vst [vmem:[#allocation2 + $0x18] sm:$0xf8] %v495_v25  ;;  %v445_v28 = vmul.f32 0.00390625, %v436_v27  ;;  %v439_v29 = vpop.xlane.xlu1 %438 }
 0x26c   :  { %v497_v30 = vsel %vm452_vm3, %v495_v25, %v496_v26  ;;  %v446_v31 = vmul.f32 0.00390625, %v439_v29 }
 0x26d   :  { %509 = vst [vmem:[#allocation2 + $0x30] sm:$0xff] %v497_v30  ;;  %510 = vst [vmem:[#allocation2 + $0x38] sm:$0xff] %v497_v30  ;;  %v454_v32 = vrot.slane %v445_v28, 5 }
 0x26e   :  { %v456_v33 = vrot.slane %v446_v31, 5  ;;  %v483_v34 = vpop.xlane.xlu0 %482 }
 0x26f   :  { %v455_v35 = vsel %vm452_vm3, %v453_v20, %v454_v32  ;;  %v489_v36 = vmul.f32 0.00390625, %v483_v34  ;;  %v442_v37 = vpop.xlane.xlu1 %441 }
 0x270   :  { %467 = vst [vmem:[#allocation2 + $0x20] sm:$0xff] %v455_v35  ;;  %468 = vst [vmem:[#allocation2 + $0x28] sm:$0xff] %v455_v35  ;;  %v457_v38 = vsel %vm452_vm3, %v454_v32, %v456_v33  ;;  %v447_v39 = vmul.f32 0.00390625, %v442_v37 }
 0x271   :  { %469 = vst [vmem:[#allocation2 + $0x40] sm:$0xff] %v457_v38  ;;  %470 = vst [vmem:[#allocation2 + $0x48] sm:$0xff] %v457_v38  ;;  %v498_v40 = vrot.slane %v489_v36, 5 }
 0x272   :  { %v458_v41 = vrot.slane %v447_v39, 5 }
 0x273   :  { %v499_v42 = vsel %vm452_vm3, %v496_v26, %v498_v40  ;;  %v486_v43 = vpop.xlane.xlu1 %485 }
 0x274   :  { %511 = vst [vmem:[#allocation2 + $0x50] sm:$0xff] %v499_v42  ;;  %512 = vst [vmem:[#allocation2 + $0x58] sm:$0xff] %v499_v42  ;;  %v459_v44 = vsel %vm452_vm3, %v456_v33, %v458_v41  ;;  %v490_v45 = vmul.f32 0.00390625, %v486_v43 }
 0x275   :  { %473 = vst [vmem:[#allocation2 + $0x80] sm:$0x7] %v458_v41  ;;  %474 = vst [vmem:[#allocation2 + $0x88] sm:$0x7] %v458_v41 }
 0x276   :  { %471 = vst [vmem:[#allocation2 + $0x60] sm:$0xff] %v459_v44  ;;  %472 = vst [vmem:[#allocation2 + $0x68] sm:$0xff] %v459_v44  ;;  %v500_v46 = vrot.slane %v490_v45, 5 }
 0x278   :  { %v501_v47 = vsel %vm452_vm3, %v498_v40, %v500_v46  ;;  %515 = vst [vmem:[#allocation2 + $0x90] sm:$0x7] %v500_v46  ;;  %516 = vst [vmem:[#allocation2 + $0x98] sm:$0x7] %v500_v46 }
 0x279   :  { %513 = vst [vmem:[#allocation2 + $0x70] sm:$0xff] %v501_v47  ;;  %514 = vst [vmem:[#allocation2 + $0x78] sm:$0xff] %v501_v47 }
 0x27a   :  { %584 = shalt.err (!%p581_p4)
}
 0x27b   :  { %s585_s26 = scalar_lea.hbm %s685_s2, 2560 }
 0x27c   :  { %p586_p5 = scmp.ne.s32.totalorder %s685_s2, %s585_s26  ;;  %p589_p6 = scmp.lt.u32.totalorder %s585_s26, %s685_s2 }
 0x27e   :  { %p591_p7 = pnand %p589_p6, %p586_p5 }
 0x280   :  { %594 = shalt.err (!%p591_p7)
}
 0x281   :  { %s599_s3 = smov 512   ;;  %s600_s4 = smov 32  }
 0x282   :  { %528 = dma.vmem_to_hbm [thread:$0]  %s523_s22, 2560, %s685_s2, [#allocation3], %s599_s3, %s599_s3, %s600_s4  }
 0x283   :  { %595 = dma.done.wait [#allocation3], 2560  }
 0x284   :  { %596 = vsyncadd [#allocation3], 4294964736 }
 0x285   :  { %532 = vsyncpa [#allocation3], 1 }

</bundles_post_ra>
